<compile_context>
chip_gen: v7x
topology: tpu7x:2x2x1
jax: 0.10.0
libtpu: 0.0.40
codegen_flags: <defaults>
</compile_context>

<pallas_src>
import jax
import jax.numpy as jnp
from jax.experimental import pallas as pl
from jax.experimental.pallas import tpu as pltpu


def _mlp_kernel(x_ref, w1_ref, b1_ref, w2_ref, b2_ref, o_ref):
    # Cast activations to bf16 in-kernel (VPU cast, free vs. HBM traffic).
    x = x_ref[...].astype(w1_ref.dtype)
    # First linear: bf16 x bf16 -> f32 accumulate on the MXU; bias + ReLU in f32.
    h = jnp.dot(x, w1_ref[...], preferred_element_type=jnp.float32)
    h = jnp.maximum(h + b1_ref[...], 0.0)
    # Second linear: cast ReLU output to bf16 for the MXU's bf16 path.
    y = jnp.dot(h.astype(w2_ref.dtype), w2_ref[...],
                preferred_element_type=jnp.float32)
    o_ref[...] = (y + b2_ref[...]).astype(o_ref.dtype)


def _round_up(x: int, m: int) -> int:
    return (x + m - 1) // m * m


def mlp_forward(x, w1, b1, w2, b2, *, block_m: int = 2048,
                min_grid_steps: int = 8, param_dtype=jnp.bfloat16):
    """x: (B, in), w1: (in, hidden), b1: (1, hidden), w2: (hidden, out), b2: (1, out)."""
    batch, in_features = x.shape
    hidden = w1.shape[1]
    out_features = w2.shape[1]

    # Hidden dim is zero-padded to 128 lanes (exact math); output is NOT padded.
    hid_p = _round_up(hidden, 128)

    # Batch tile: sublane-aligned, capped at block_m, and small enough that the
    # grid has >= min_grid_steps steps when the batch allows it (v7x: 2 TCs).
    tm_cap = _round_up(max(1, (batch + min_grid_steps - 1) // min_grid_steps), 8)
    tm = max(8, min(block_m, tm_cap))
    b_p = _round_up(batch, tm)

    # x stays in its original dtype; only pad the batch remainder (if any).
    # Note: padded rows compute ReLU(b1) @ w2 + b2 (garbage) but are sliced off.
    if b_p != batch:
        x_in = jnp.zeros((b_p, in_features), x.dtype).at[:batch].set(x)
    else:
        x_in = x

    # Tiny, zero-padded, dtype-cast weights/biases (padded entries are 0 ->
    # math is exact).
    w1_p = jnp.zeros((in_features, hid_p), param_dtype).at[:, :hidden].set(
        w1.astype(param_dtype))
    b1_p = jnp.zeros((1, hid_p), jnp.float32).at[:, :hidden].set(
        b1.astype(jnp.float32))
    w2_p = jnp.zeros((hid_p, out_features), param_dtype).at[:hidden, :].set(
        w2.astype(param_dtype))
    b2_p = b2.astype(jnp.float32).reshape(1, out_features)

    grid = (b_p // tm,)
    vmem = pltpu.MemorySpace.VMEM

    cost = pl.CostEstimate(
        flops=2 * b_p * (in_features * hid_p + hid_p * out_features),
        transcendentals=0,
        bytes_accessed=(x_in.size * x_in.dtype.itemsize
                        + w1_p.size * w1_p.dtype.itemsize
                        + w2_p.size * w2_p.dtype.itemsize
                        + (b1_p.size + b2_p.size) * 4
                        + b_p * out_features * 4),
    )

    out = pl.pallas_call(
        _mlp_kernel,
        out_shape=jax.ShapeDtypeStruct((b_p, out_features), jnp.float32),
        grid=grid,
        in_specs=[
            pl.BlockSpec((tm, in_features), lambda i: (i, 0), memory_space=vmem),
            pl.BlockSpec((in_features, hid_p), lambda i: (0, 0), memory_space=vmem),
            pl.BlockSpec((1, hid_p), lambda i: (0, 0), memory_space=vmem),
            pl.BlockSpec((hid_p, out_features), lambda i: (0, 0), memory_space=vmem),
            pl.BlockSpec((1, out_features), lambda i: (0, 0), memory_space=vmem),
        ],
        out_specs=pl.BlockSpec((tm, out_features), lambda i: (i, 0),
                               memory_space=vmem),
        compiler_params=pltpu.CompilerParams(
            dimension_semantics=("parallel",)),
        cost_estimate=cost,
    )(x_in, w1_p, b1_p, w2_p, b2_p)

    if b_p != batch:
        out = out[:batch]
    return out


def init_mlp_params(key, input_size: int, output_size: int, hidden: int = 32):
    """Deterministic parameter init mimicking nn.Linear shapes.

    PyTorch stores Linear weight as (out, in); we store it transposed (in, out)
    so the kernel can do x @ W directly.
    """
    k1, k2, k3, k4 = jax.random.split(key, 4)
    lim1 = 1.0 / jnp.sqrt(input_size)
    lim2 = 1.0 / jnp.sqrt(hidden)
    w1 = jax.random.uniform(k1, (input_size, hidden), jnp.float32, -lim1, lim1)
    b1 = jax.random.uniform(k2, (1, hidden), jnp.float32, -lim1, lim1)
    w2 = jax.random.uniform(k3, (hidden, output_size), jnp.float32, -lim2, lim2)
    b2 = jax.random.uniform(k4, (1, output_size), jnp.float32, -lim2, lim2)
    return w1, b1, w2, b2


def _reference(x, w1, b1, w2, b2):
    # Mirrors the kernel's bf16-operand / f32-accumulate numerics.
    f32 = jnp.float32
    xb = x.astype(jnp.bfloat16).astype(f32)
    w1b = w1.astype(jnp.bfloat16).astype(f32)
    w2b = w2.astype(jnp.bfloat16).astype(f32)
    h = jnp.maximum(xb @ w1b + b1, 0.0).astype(jnp.bfloat16).astype(f32)
    return h @ w2b + b2


if __name__ == "__main__":
    key = jax.random.PRNGKey(0)
    batch, input_size, output_size = 2, 8, 4

    kx, kp = jax.random.split(key)
    x = jax.random.normal(kx, (batch, input_size), jnp.float32)
    w1, b1, w2, b2 = init_mlp_params(kp, input_size, output_size)

    out = jax.block_until_ready(mlp_forward(x, w1, b1, w2, b2))
    ref = _reference(x, w1, b1, w2, b2)
    assert out.shape == (batch, output_size)
    assert jnp.allclose(out, ref, atol=1e-4, rtol=1e-4)

    # Also exercise the multi-step grid path (batch split over >= 8 tiles).
    x_big = jax.random.normal(jax.random.PRNGKey(1), (512, input_size),
                              jnp.float32)
    out_big = jax.block_until_ready(mlp_forward(x_big, w1, b1, w2, b2))
    ref_big = _reference(x_big, w1, b1, w2, b2)
    assert out_big.shape == (512, output_size)
    assert jnp.allclose(out_big, ref_big, atol=1e-4, rtol=1e-4)

    print("KERNEL_OK")
</pallas_src>

<mosaic_0001>
module attributes {stable_mosaic.version = 11 : i64} {
  func.func @_mlp_kernel(%arg0: i32, %arg1: memref<8x8xf32, #tpu.memory_space<vmem>>, %arg2: memref<8x128xbf16, #tpu.memory_space<vmem>>, %arg3: memref<1x128xf32, #tpu.memory_space<vmem>>, %arg4: memref<128x4xbf16, #tpu.memory_space<vmem>>, %arg5: memref<1x4xf32, #tpu.memory_space<vmem>>, %arg6: memref<8x4xf32, #tpu.memory_space<vmem>>) attributes {dimension_semantics = [#tpu.dimension_semantics<parallel>], iteration_bounds = array<i64: 1>, scalar_prefetch = 0 : i64, scratch_operands = 0 : i64, tpu.core_type = #tpu.core_type<tc>, window_params = [{transform_indices = @transform_0, window_bounds = array<i64: 8, 8>}, {pipeline_mode = #tpu.pipeline_mode<synchronous>, transform_indices = @transform_1, window_bounds = array<i64: 8, 128>}, {pipeline_mode = #tpu.pipeline_mode<synchronous>, transform_indices = @transform_2, window_bounds = array<i64: 1, 128>}, {pipeline_mode = #tpu.pipeline_mode<synchronous>, transform_indices = @transform_3, window_bounds = array<i64: 128, 4>}, {pipeline_mode = #tpu.pipeline_mode<synchronous>, transform_indices = @transform_4, window_bounds = array<i64: 1, 4>}, {transform_indices = @transform_5, window_bounds = array<i64: 8, 4>}]} {
    %c0 = arith.constant 0 : index
    %c0_0 = arith.constant 0 : index
    %0 = vector.load %arg1[%c0, %c0_0] : memref<8x8xf32, #tpu.memory_space<vmem>>, vector<8x8xf32>
    %1 = arith.truncf %0 : vector<8x8xf32> to vector<8x8xbf16>
    %c0_1 = arith.constant 0 : index
    %c0_2 = arith.constant 0 : index
    %2 = vector.load %arg2[%c0_1, %c0_2] : memref<8x128xbf16, #tpu.memory_space<vmem>>, vector<8x128xbf16>
    %cst = arith.constant dense<0.000000e+00> : vector<8x128xf32>
    %3 = tpu.matmul %1, %2, %cst {dimension_numbers = #tpu.dot_dimension_numbers<[1], [0], [0], [1], [0, 0, 1, 1], [], []>} : vector<8x8xbf16>, vector<8x128xbf16>, vector<8x128xf32> -> vector<8x128xf32>
    %c0_3 = arith.constant 0 : index
    %c0_4 = arith.constant 0 : index
    %4 = vector.load %arg3[%c0_3, %c0_4] : memref<1x128xf32, #tpu.memory_space<vmem>>, vector<1x128xf32>
    %5 = vector.broadcast %4 : vector<1x128xf32> to vector<8x128xf32>
    %6 = arith.addf %3, %5 : vector<8x128xf32>
    %cst_5 = arith.constant 0.000000e+00 : f32
    %7 = vector.broadcast %cst_5 : f32 to vector<8x128xf32>
    %8 = arith.maximumf %6, %7 : vector<8x128xf32>
    %9 = arith.truncf %8 : vector<8x128xf32> to vector<8x128xbf16>
    %c0_6 = arith.constant 0 : index
    %c0_7 = arith.constant 0 : index
    %10 = vector.load %arg4[%c0_6, %c0_7] : memref<128x4xbf16, #tpu.memory_space<vmem>>, vector<128x4xbf16>
    %cst_8 = arith.constant dense<0.000000e+00> : vector<8x4xf32>
    %11 = tpu.matmul %9, %10, %cst_8 {dimension_numbers = #tpu.dot_dimension_numbers<[1], [0], [0], [1], [0, 0, 1, 1], [], []>} : vector<8x128xbf16>, vector<128x4xbf16>, vector<8x4xf32> -> vector<8x4xf32>
    %c0_9 = arith.constant 0 : index
    %c0_10 = arith.constant 0 : index
    %12 = vector.load %arg5[%c0_9, %c0_10] : memref<1x4xf32, #tpu.memory_space<vmem>>, vector<1x4xf32>
    %13 = vector.broadcast %12 : vector<1x4xf32> to vector<8x4xf32>
    %14 = arith.addf %11, %13 : vector<8x4xf32>
    %c0_11 = arith.constant 0 : index
    %c0_12 = arith.constant 0 : index
    %15 = vector.load %arg6[%c0_11, %c0_12] : memref<8x4xf32, #tpu.memory_space<vmem>>, vector<8x4xf32>
    tpu.vector_store %arg6[%c0_11, %c0_12], %14 {strides = array<i32>} : memref<8x4xf32, #tpu.memory_space<vmem>>, vector<8x4xf32>,
    return
  }
  func.func @transform_0(%arg0: i32) -> (i32, i32) {
    %c0_i32 = arith.constant 0 : i32
    %c0_i32_0 = arith.constant 0 : i32
    return %arg0, %c0_i32 : i32, i32
  }
  func.func @transform_1(%arg0: i32) -> (i32, i32) {
    %c0_i32 = arith.constant 0 : i32
    %c0_i32_0 = arith.constant 0 : i32
    %c0_i32_1 = arith.constant 0 : i32
    return %c0_i32, %c0_i32_0 : i32, i32
  }
  func.func @transform_2(%arg0: i32) -> (i32, i32) {
    %c0_i32 = arith.constant 0 : i32
    %c0_i32_0 = arith.constant 0 : i32
    %c0_i32_1 = arith.constant 0 : i32
    return %c0_i32, %c0_i32_0 : i32, i32
  }
  func.func @transform_3(%arg0: i32) -> (i32, i32) {
    %c0_i32 = arith.constant 0 : i32
    %c0_i32_0 = arith.constant 0 : i32
    %c0_i32_1 = arith.constant 0 : i32
    return %c0_i32, %c0_i32_0 : i32, i32
  }
  func.func @transform_4(%arg0: i32) -> (i32, i32) {
    %c0_i32 = arith.constant 0 : i32
    %c0_i32_0 = arith.constant 0 : i32
    %c0_i32_1 = arith.constant 0 : i32
    return %c0_i32, %c0_i32_0 : i32, i32
  }
  func.func @transform_5(%arg0: i32) -> (i32, i32) {
    %c0_i32 = arith.constant 0 : i32
    %c0_i32_0 = arith.constant 0 : i32
    return %arg0, %c0_i32 : i32, i32
  }
}

</mosaic_0001>

<bundles_post_ra>
// kernel: tpu_custom_call.1
= control target key start
LH: loop header
LB: loop body
LE: loop exit
PB: predicated region body
PF: predicated region fallthrough
CT: control target
= control target key end

     0   :  { %vm35_vm0 = vcmask 1043456   ;;  %v256_v0 = vmov 0.0   ;;  %vm257_vm1 = vmmov 0   ;;  %vm31_vm2 = vcmask 64512   ;;  %s327_s1 = inlined_call_operand.vmem [shape: bf16[8,128], index: 1, kind: input, shape index: {}]   ;;  %s328_s0 = inlined_call_operand.vmem [shape: f32[8,8], index: 0, kind: input, shape index: {}]   ;;  %s329_s3 = inlined_call_operand.vmem [shape: bf16[128,4], index: 3, kind: input, shape index: {}]   ;;  %s330_s2 = inlined_call_operand.vmem [shape: f32[1,128], index: 2, kind: input, shape index: {}]   ;;  %s331_s4 = inlined_call_operand.vmem [shape: f32[1,4], index: 4, kind: input, shape index: {}]   ;;  %s332_s5 = inlined_call_operand.vmem [shape: f32[8,4], index: 5, kind: output, shape index: {}]  }
   0x1   :  { %220 = vmatprep.subr.bf16.mxu0 %v256_v0  ;;  %v23_v1 = vld [vmem:[%s327_s1] sm:$0xf]  ;;  %222 = vmatprep.mubr.msk.bf16.mxu0 %vm257_vm1, %v256_v0  ;;  %v249_v6 = vld [vmem:[%s329_s3 + $0x8] sm:$0xff]   ;;  %v250_v7 = vld [vmem:[%s329_s3 + $0x10] sm:$0xff]   ;;  %vm192_vm3 = vcmask 31744  }
   0x2   :  { %v21_v2 = vld [vmem:[%s328_s0] sm:$0xff]  ;;  %v37_v3 = vsel %vm35_vm0, %v23_v1, 0  ;;  %226 = vmatprep.subr.bf16.mxu1 %v256_v0  ;;  %242 = vmatprep.mubr.msk.bf16.mxu1 %vm257_vm1, %v256_v0  ;;  %v251_v8 = vld [vmem:[%s329_s3 + $0x18] sm:$0xff]   ;;  %v253_v10 = vld [vmem:[%s329_s3 + $0x28] sm:$0xff]  }
   0x3   :  { %v22_v4 = vpack.c.bf16 %v21_v2, %v21_v2  ;;  %v248_v5 = vld [vmem:[%s329_s3] sm:$0xff]   ;;  %221 = vmatpush3.bf16.msra.mxu0 %v37_v3  ;;  %v254_v11 = vld [vmem:[%s329_s3 + $0x30] sm:$0xff]   ;;  %v255_v12 = vld [vmem:[%s329_s3 + $0x38] sm:$0xff]  }
   0x4   :  { %227 = vmatpush3.bf16.msra.mxu1 %v248_v5  ;;  %v252_v9 = vld [vmem:[%s329_s3 + $0x20] sm:$0xff]  }
   0x5   :  { %228 = vmatprep.subr.bf16.mxu1 %v256_v0  ;;  %v198_v13 = vld [vmem:[%s330_s2] ss:$0 sm:$0xff] }
   0x6   :  { %223 = vmatmul.mubr.msk.bf16.vlgmr.msra.gmra.mrb[0].mxu0 %vm31_vm2, %v22_v4  ;;  %v200_v21 = vld [vmem:[%s331_s4] ss:$0 sm:$0xff] }
   0x8   :  { %229 = vmatpush3.bf16.msra.mxu1 %v249_v6 }
   0x9   :  { %230 = vmatprep.subr.bf16.mxu1 %v256_v0 }
   0xc   :  { %231 = vmatpush3.bf16.msra.mxu1 %v250_v7 }
   0xd   :  { %232 = vmatprep.subr.bf16.mxu1 %v256_v0 }
  0x10   :  { %233 = vmatpush3.bf16.msra.mxu1 %v251_v8 }
  0x11   :  { %234 = vmatprep.subr.bf16.mxu1 %v256_v0 }
  0x14   :  { %235 = vmatpush3.bf16.msra.mxu1 %v252_v9 }
  0x15   :  { %236 = vmatprep.subr.bf16.mxu1 %v256_v0 }
  0x18   :  { %237 = vmatpush3.bf16.msra.mxu1 %v253_v10 }
  0x19   :  { %238 = vmatprep.subr.bf16.mxu1 %v256_v0 }
  0x1c   :  { %239 = vmatpush3.bf16.msra.mxu1 %v254_v11 }
  0x1d   :  { %240 = vmatprep.subr.bf16.mxu1 %v256_v0 }
  0x20   :  { %241 = vmatpush3.bf16.msra.mxu1 %v255_v12 }
  0xd9   :  { %v73_v14 = vpop.f32.mrb[0].mxu0 }
  0xda   :  { %v74_v15 = vadd.f32 %v198_v13, %v73_v14  ;;  %v224_v16 = vpop.f32.mrb[1].mxu0 }
  0xdb   :  { %v76_v17 = vpop.f32.mrb[2].mxu0 }
  0xdc   :  { %v79_v18 = vmax.f32 %v74_v15, 0.0  ;;  %v225_v19 = vpop.f32.mrb[3].mxu0 }
  0xde   :  { %v80_v20 = vpack.c.bf16 %v79_v18, %v79_v18 }
  0xe0   :  { %243 = vmatmul.mubr.bf16.vlgmr.msra.gmra.mrb[0].mxu1 %v80_v20 }
 0x1b3   :  { %v186_v22 = vpop.f32.mrb[0].mxu1 }
 0x1b4   :  { %v187_v23 = vadd.f32 %v200_v21, %v186_v22  ;;  %v244_v24 = vpop.f32.mrb[1].mxu1 }
 0x1b5   :  { %v189_v25 = vpop.f32.mrb[2].mxu1 }
 0x1b6   :  { %193 = vst.msk [vmem:[%s332_s5] sm:$0xff] %vm192_vm3, %v187_v23  ;;  %v245_v26 = vpop.f32.mrb[3].mxu1 }

</bundles_post_ra>
